<compile_context>
chip_gen: v5e
topology: v5e:2x2
jax: 0.10.0
libtpu: 0.0.40
codegen_flags: <defaults>
</compile_context>

<pallas_src>
import functools
import math

import jax
import jax.numpy as jnp
from jax.experimental import pallas as pl
from jax.experimental.pallas import tpu as pltpu


def make_positional_encoding(max_len, d_model, dtype=jnp.float32):
    """Replicates the PyTorch buffer: pe[:, 0::2]=sin, pe[:, 1::2]=cos. Shape (max_len, d_model)."""
    position = jnp.arange(max_len, dtype=jnp.float32)[:, None]                    # (L, 1)
    div_term = jnp.exp(jnp.arange(0, d_model, 2, dtype=jnp.float32)
                       * (-math.log(10000.0) / d_model))                          # (D/2,)
    pe = jnp.zeros((max_len, d_model), dtype=jnp.float32)
    pe = pe.at[:, 0::2].set(jnp.sin(position * div_term))
    pe = pe.at[:, 1::2].set(jnp.cos(position * div_term))
    return pe.astype(dtype)


def _block_budget_bytes():
    """Per-x-block VMEM budget.  Double-buffered x-in + x-out streams ~ 4x this and
    must sit under the scoped-VMEM default of the generation
    (v5e: 16 MiB, v6e: 32 MiB, v7x: 32 MiB scoped per TC)."""
    try:
        kind = jax.devices()[0].device_kind.lower()
    except Exception:
        return 2 * 1024 * 1024
    if "v5" in kind:
        return 2 * 1024 * 1024
    if "v6" in kind:
        return 6 * 1024 * 1024
    return 4 * 1024 * 1024          # v7x / unknown: budget vs 32 MiB scoped per TC


def _choose_tile_s(S, row_bytes, itemsize):
    sub = max(8, 32 // max(int(itemsize), 1))   # sublane pack: 8 f32, 16 bf16
    budget = _block_budget_bytes()
    tile = max(1, budget // max(row_bytes, 1))
    # Keep >= ~4 grid steps when S is big enough so double buffering stays alive
    # and v7x can shard the parallel axis across both TensorCores.
    tile = min(tile, max(1, pl.cdiv(S, 4)))
    # Round down to the sublane pack so every interior tile is dense (only the
    # final ragged tile is masked); never go below one pack (or S itself).
    tile = max(sub, (tile // sub) * sub)
    return min(tile, S)


def _pos_enc_kernel(seed_ref, x_ref, pe_ref, o_ref, *, p, train, batch, tile_s):
    x = x_ref[...]                                              # (tile_s, B*D), lane-dense
    # Replicate pe across the B lane-groups: columns of x are [b0 d0..D-1, b1 d0..D-1, ...].
    pe = jnp.tile(pe_ref[...].astype(x.dtype), (1, batch))      # (tile_s, B*D)
    y = x + pe

    if train and p >= 1.0:                                      # degenerate: drop everything
        o_ref[...] = jnp.zeros_like(y).astype(o_ref.dtype)
        return

    if train and p > 0.0:
        rows, cols = y.shape
        # Counter-based hash PRNG on the absolute flat element index: works under
        # both Mosaic and interpret lowering (unlike pltpu.prng_*), is independent
        # of the tiling, and decorrelates tiles properly.  Pure VPU work, which has
        # huge slack under this HBM-bound stream.
        r = jax.lax.broadcasted_iota(jnp.int32, (rows, cols), 0).astype(jnp.uint32)
        c = jax.lax.broadcasted_iota(jnp.int32, (rows, cols), 1).astype(jnp.uint32)
        row0 = (pl.program_id(0) * tile_s).astype(jnp.uint32)
        idx = (row0 + r) * jnp.uint32(cols) + c                 # absolute element index
        seed = seed_ref[0].astype(jnp.uint32)
        h = idx * jnp.uint32(0x9E3779B1) + seed * jnp.uint32(0x85EBCA77)
        h = h ^ (h >> 16)
        h = h * jnp.uint32(0x7FEB352D)
        h = h ^ (h >> 15)
        h = h * jnp.uint32(0x846CA68B)
        h = h ^ (h >> 16)
        thresh = jnp.uint32(min(int(p * 4294967296.0), 4294967295))
        keep = h >= thresh                                      # P(drop) = p
        scale = jnp.asarray(1.0 / (1.0 - p), dtype=y.dtype)
        y = jnp.where(keep, y * scale, jnp.zeros_like(y))

    o_ref[...] = y.astype(o_ref.dtype)


def positional_encoding(x, pe, *, dropout_p=0.1, train=False, seed=0,
                        tile_s=None, donate_x=False):
    """x: (seq, batch, d_model); pe: (max_len, d_model) from make_positional_encoding."""
    S, B, D = x.shape
    assert pe.shape[0] >= S and pe.shape[1] == D

    # Free view: (seq, batch, d_model) is contiguous, so flattening batch into the
    # lane axis costs nothing and makes every vld/vst lane-dense.
    x2 = x.reshape(S, B * D)

    if tile_s is None:
        tile_s = _choose_tile_s(S, B * D * x.dtype.itemsize, x.dtype.itemsize)
    tile_s = min(int(tile_s), S)
    grid = (pl.cdiv(S, tile_s),)

    kernel = functools.partial(_pos_enc_kernel, p=float(dropout_p),
                               train=bool(train), batch=B, tile_s=tile_s)
    seed_arr = jnp.asarray([seed], dtype=jnp.int32)

    out2 = pl.pallas_call(
        kernel,
        out_shape=jax.ShapeDtypeStruct((S, B * D), x.dtype),
        grid_spec=pltpu.PrefetchScalarGridSpec(
            num_scalar_prefetch=1,  # dropout seed lives in SMEM
            grid=grid,
            in_specs=[
                pl.BlockSpec((tile_s, B * D), lambda i, seed_ref: (i, 0)),  # x tile
                pl.BlockSpec((tile_s, D),     lambda i, seed_ref: (i, 0)),  # pe rows (no wrapper slice)
            ],
            out_specs=pl.BlockSpec((tile_s, B * D), lambda i, seed_ref: (i, 0)),
        ),
        compiler_params=pltpu.CompilerParams(
            # Pure elementwise op: rows independent -> v7x shards the grid over both TCs.
            dimension_semantics=("parallel",),
        ),
        # Optional donation of x (operand 1 after the prefetched seed) into output 0.
        input_output_aliases=({1: 0} if donate_x else {}),
    )(seed_arr, x2, pe)

    return out2.reshape(S, B, D)


if __name__ == "__main__":
    key = jax.random.PRNGKey(0)
    MAX_LEN = 128
    D = 32
    pe = make_positional_encoding(MAX_LEN, D, dtype=jnp.float32)

    # --- small shape (seq=8, batch=2, d_model=32), eval mode: exact check ---
    S, B = 8, 2
    x = jax.random.normal(key, (S, B, D), dtype=jnp.float32)
    out = jax.block_until_ready(positional_encoding(x, pe, dropout_p=0.1, train=False))
    ref = x + pe[:S][:, None, :]
    assert out.shape == x.shape and out.dtype == x.dtype
    assert jnp.allclose(out, ref, atol=1e-6, rtol=1e-6)

    # --- longer seq (multi-tile grid, exercises pipelining path), eval mode ---
    S2, B2 = 64, 2
    x2 = jax.random.normal(jax.random.PRNGKey(1), (S2, B2, D), dtype=jnp.float32)
    out2 = jax.block_until_ready(positional_encoding(x2, pe, dropout_p=0.1, train=False))
    ref2 = x2 + pe[:S2][:, None, :]
    assert jnp.allclose(out2, ref2, atol=1e-6, rtol=1e-6)

    # --- train mode: in-kernel hash-based dropout ---
    p = 0.1
    out_tr = jax.block_until_ready(
        positional_encoding(x2, pe, dropout_p=p, train=True, seed=123))
    expected_kept = ref2 / (1.0 - p)
    dropped = out_tr == 0.0
    matches = jnp.isclose(out_tr, expected_kept, atol=1e-5, rtol=1e-5)
    # Every element is either dropped (exact 0) or scaled-kept.
    assert bool(jnp.all(dropped | matches))
    n_drop = int(jnp.sum(dropped))
    assert 0 < n_drop < out_tr.size // 2, n_drop  # p=0.1 over 4096 elems

    print("KERNEL_OK")
</pallas_src>

<mosaic_0001>
module attributes {stable_mosaic.version = 11 : i64} {
  func.func @_pos_enc_kernel(%arg0: i32, %arg1: memref<1xi32, #tpu.memory_space<smem>>, %arg2: memref<8x64xf32, #tpu.memory_space<vmem>>, %arg3: memref<8x32xf32, #tpu.memory_space<vmem>>, %arg4: memref<8x64xf32, #tpu.memory_space<vmem>>) attributes {dimension_semantics = [#tpu.dimension_semantics<parallel>], iteration_bounds = array<i64: 1>, scalar_prefetch = 1 : i64, scratch_operands = 0 : i64, tpu.core_type = #tpu.core_type<tc>, window_params = [{transform_indices = @transform_0, window_bounds = array<i64: 8, 64>}, {transform_indices = @transform_1, window_bounds = array<i64: 8, 32>}, {transform_indices = @transform_2, window_bounds = array<i64: 8, 64>}]} {
    %c0 = arith.constant 0 : index
    %c0_0 = arith.constant 0 : index
    %0 = vector.load %arg2[%c0, %c0_0] : memref<8x64xf32, #tpu.memory_space<vmem>>, vector<8x64xf32>
    %c0_1 = arith.constant 0 : index
    %c0_2 = arith.constant 0 : index
    %1 = vector.load %arg3[%c0_1, %c0_2] : memref<8x32xf32, #tpu.memory_space<vmem>>, vector<8x32xf32>
    %2 = tpu.concatenate %1, %1 in 1 : vector<8x32xf32>, vector<8x32xf32> -> vector<8x64xf32>
    %3 = arith.addf %0, %2 : vector<8x64xf32>
    %c0_3 = arith.constant 0 : index
    %c0_4 = arith.constant 0 : index
    %4 = vector.load %arg4[%c0_3, %c0_4] : memref<8x64xf32, #tpu.memory_space<vmem>>, vector<8x64xf32>
    tpu.vector_store %arg4[%c0_3, %c0_4], %3 {strides = array<i32>} : memref<8x64xf32, #tpu.memory_space<vmem>>, vector<8x64xf32>,
    return
  }
  func.func @transform_0(%arg0: i32, %arg1: memref<1xi32, #tpu.memory_space<smem>>) -> (i32, i32) {
    %c0_i32 = arith.constant 0 : i32
    %c0_i32_0 = arith.constant 0 : i32
    return %arg0, %c0_i32 : i32, i32
  }
  func.func @transform_1(%arg0: i32, %arg1: memref<1xi32, #tpu.memory_space<smem>>) -> (i32, i32) {
    %c0_i32 = arith.constant 0 : i32
    %c0_i32_0 = arith.constant 0 : i32
    return %arg0, %c0_i32 : i32, i32
  }
  func.func @transform_2(%arg0: i32, %arg1: memref<1xi32, #tpu.memory_space<smem>>) -> (i32, i32) {
    %c0_i32 = arith.constant 0 : i32
    %c0_i32_0 = arith.constant 0 : i32
    return %arg0, %c0_i32 : i32, i32
  }
}

</mosaic_0001>

<bundles_post_ra>
// kernel: tpu_custom_call.1
= control target key start
LH: loop header
LB: loop body
LE: loop exit
PB: predicated region body
PF: predicated region fallthrough
CT: control target
= control target key end

     0   :  { %s100_s0 = inlined_call_operand.<no memory space> [shape: s32[1], index: 0, kind: input, shape index: {}]   ;;  %s101_s1 = inlined_call_operand.vmem [shape: f32[8,64], index: 1, kind: input, shape index: {}]   ;;  %s102_s2 = inlined_call_operand.vmem [shape: f32[128,32], index: 2, kind: input, shape index: {}]   ;;  %s103_s3 = inlined_call_operand.hbm [shape: f32[8,64], index: 3, kind: output, shape index: {}]  }
   0x1   :  { %v15_v0 = vld [vmem:[%s102_s2] sm:$0xff] }
   0x2   :  { %9 = vsyncpa [#allocation5], 0  ;;  %s69_s14 = smov 32   ;;  %vm20_vm0 = vcmask 261120   ;;  %v14_v1 = vld [vmem:[%s101_s1] sm:$0xff]  ;;  %s70_s0 = smov [#allocation4]  }
   0x3   :  { %17 = vrot.lane.b32.xlu0 %v15_v0, %s69_s14  ;;  %s30_s17 = sshll.u32 %s70_s0, 4  ;;  %s32_s20 = sshll.u32 %s103_s3, 4  ;;  %vm23_vm1 = vcmask 523264   ;;  %s31_s17 = int_to_ptr.vmem [resolvable:$true] %s30_s17  ;;  %s33_s20 = int_to_ptr.hbm [resolvable:$true] %s32_s20 }
  0x75   :  { %v18_v2 = vpop.permute.xlu0 %17 }
  0x76   :  { %v21_v3 = vsel %vm20_vm0, %v15_v0, %v18_v2 }
  0x77   :  { %v22_v4 = vadd.f32 %v21_v3, %v14_v1 }
  0x79   :  { %24 = vst.msk [vmem:[#allocation4] sm:$0xff] %vm23_vm1, %v22_v4 }
  0x7a   :  { %35 = dma.vmem_to_hbm [thread:$0]  %s31_s17, 128, %s33_s20, [#allocation5]  }
  0x7b   :  { %67 = dma.done.wait [#allocation5], 128  }
  0x7c   :  { %68 = vsyncadd [#allocation5], 4294967168 }
  0x7d   :  { %40 = vsyncpa [#allocation5], 1 }

</bundles_post_ra>
